<compile_context>
chip_gen: v6e
topology: v6e:2x2x1
jax: 0.10.0
libtpu: 0.0.40
codegen_flags: <defaults>
</compile_context>

<pallas_src>
import math

import jax
import jax.numpy as jnp
from jax.experimental import pallas as pl
from jax.experimental.pallas import tpu as pltpu

_LOG2 = math.log(2.0)
_LANES = 128


def _lcdice_partial_kernel(pred_ref, targ_ref, out_ref, acc_ref):
    # pred_ref / targ_ref: (1, TR, 128) tile of the (B, R_pad, 128) inputs.
    # out_ref: (1, 4, 128) per-batch lane partial sums (written once, at end).
    # acc_ref: (4, 128) f32 VMEM accumulator, resident across the row axis.
    r = pl.program_id(1)

    @pl.when(r == 0)
    def _():
        acc_ref[...] = jnp.zeros_like(acc_ref)

    p = pred_ref[0].astype(jnp.float32)  # (TR, 128)
    y = targ_ref[0].astype(jnp.float32)  # (TR, 128)

    # sigmoid(p) = 0.5 * tanh(p/2) + 0.5  -> single EUP transcendental.
    x = 0.5 * jnp.tanh(0.5 * p) + 0.5

    # log(cosh(z)) = |z| + log1p(exp(-2|z|)) - log(2)
    # (2 transcendentals instead of cosh+log, and better conditioned near 0).
    az = jnp.abs(x - y)
    log_cosh = az + jnp.log1p(jnp.exp(-2.0 * az)) - _LOG2

    # Four per-lane partial sums, accumulated with one full-tile RMW.
    part = jnp.concatenate(
        [jnp.sum(log_cosh, axis=0, keepdims=True),
         jnp.sum(x * y, axis=0, keepdims=True),
         jnp.sum(x, axis=0, keepdims=True),
         jnp.sum(y, axis=0, keepdims=True)],
        axis=0)                                   # (4, 128)
    acc_ref[...] += part

    @pl.when(r == pl.num_programs(1) - 1)
    def _():
        out_ref[...] = acc_ref[...].reshape(out_ref.shape)


def lc_dice_loss(pred, target, alpha=1.0, beta=1.0):
    """Pallas implementation of LcDiceLoss.forward.

    pred:   float array, NCHW [B, C, H, W] (logits)
    target: same shape as pred (dense targets), or [B, 1, H, W] class indices
            (one-hot'd in the wrapper, matching the PyTorch branch).
    """
    B = pred.shape[0]

    if pred.shape != target.shape:
        # F.one_hot(targets.squeeze(1)).permute(0,3,1,2) equivalent.
        # TODO(synk): one-hot is materialized in HBM by XLA (as in PyTorch);
        # fusing it into the kernel would need flat->(c,hw) index math per tile.
        num_classes = pred.shape[1]
        idx = jnp.squeeze(target, axis=1).astype(jnp.int32)
        target = jax.nn.one_hot(idx, num_classes, axis=1, dtype=pred.dtype)

    # Keep native dtypes (no wrapper f32 cast -> no extra HBM traffic);
    # the kernel upcasts tiles to f32 in VMEM.
    pred_f = pred.reshape(B, -1)
    targ_f = target.reshape(B, -1)
    F = pred_f.shape[1]

    # --- lane-dense tiling of the feature axis ---------------------------
    R = -(-F // _LANES)  # rows of 128 lanes (ceil)

    # Row-tile budget: double-buffered input tiles stay within ~8 MiB VMEM
    # (safe under every generation's scoped-VMEM budget with the 32 MiB cap).
    bytes_per_row = _LANES * (pred_f.dtype.itemsize + targ_f.dtype.itemsize) * 2
    tr_budget = max(8, ((8 * 1024 * 1024) // bytes_per_row) // 8 * 8)

    # Choose the number of row tiles first, then size TR to it: padding is
    # then bounded to < 8 rows per tile instead of up to (TR - 8) rows.
    nt = max(1, -(-R // tr_budget))
    rows_per_tile = -(-R // nt)
    TR = -(-rows_per_tile // 8) * 8              # multiple of 8 sublanes
    R_pad = nt * TR
    F_pad = R_pad * _LANES

    if F_pad != F:
        # Pad pred with a large negative (sigmoid -> 0) and target with 0 so
        # padded elements contribute exactly 0 to every partial sum.
        pad = F_pad - F
        pred_f = jnp.concatenate(
            [pred_f, jnp.full((B, pad), -1e4, dtype=pred_f.dtype)], axis=1)
        targ_f = jnp.concatenate(
            [targ_f, jnp.zeros((B, pad), dtype=targ_f.dtype)], axis=1)

    pred3 = pred_f.reshape(B, R_pad, _LANES)
    targ3 = targ_f.reshape(B, R_pad, _LANES)

    grid = (B, nt)

    partial = pl.pallas_call(
        _lcdice_partial_kernel,
        out_shape=jax.ShapeDtypeStruct((B, 4, _LANES), jnp.float32),
        grid_spec=pltpu.PrefetchScalarGridSpec(
            num_scalar_prefetch=0,
            grid=grid,
            in_specs=[
                pl.BlockSpec((1, TR, _LANES), lambda b, r: (b, r, 0)),
                pl.BlockSpec((1, TR, _LANES), lambda b, r: (b, r, 0)),
            ],
            out_specs=pl.BlockSpec((1, 4, _LANES), lambda b, r: (b, 0, 0)),
            scratch_shapes=[pltpu.VMEM((4, _LANES), jnp.float32)],
        ),
        compiler_params=pltpu.CompilerParams(
            dimension_semantics=("parallel", "arbitrary"),
            vmem_limit_bytes=32 * 1024 * 1024,
        ),
    )(pred3, targ3)

    sums = jnp.sum(partial, axis=-1)  # (B, 4): final cross-lane reduce in XLA
    lc_sum, xy_sum, x_sum, y_sum = sums[:, 0], sums[:, 1], sums[:, 2], sums[:, 3]

    log_cosh_loss = jnp.sum(lc_sum) / (B * F)  # mean over the REAL elements
    dice_per_b = 1.0 - (2.0 * xy_sum + 1.0) / (x_sum + y_sum + 1.0)
    dice_loss = jnp.mean(dice_per_b)
    return alpha * log_cosh_loss + beta * dice_loss


def lc_dice_loss_ref(pred, target, alpha=1.0, beta=1.0):
    """Pure-JAX reference (mirrors the PyTorch module)."""
    B = pred.shape[0]
    if pred.shape != target.shape:
        num_classes = pred.shape[1]
        idx = jnp.squeeze(target, axis=1).astype(jnp.int32)
        target = jax.nn.one_hot(idx, num_classes, axis=1, dtype=pred.dtype)
    x = jax.nn.sigmoid(pred.astype(jnp.float32)).reshape(B, -1)
    y = target.astype(jnp.float32).reshape(B, -1)
    log_cosh_loss = jnp.mean(jnp.log(jnp.cosh(x - y)))
    inter = jnp.sum(x * y, axis=1)
    dice = 1.0 - (2.0 * inter + 1.0) / (jnp.sum(x, axis=1) + jnp.sum(y, axis=1) + 1.0)
    return alpha * log_cosh_loss + beta * jnp.mean(dice)


if __name__ == "__main__":
    key = jax.random.PRNGKey(0)
    k1, k2, k3, k4 = jax.random.split(key, 4)

    # Case 1: dense same-shape target, F a multiple of 128 (no padding path).
    B, C, H, W = 2, 4, 16, 16
    pred = jax.random.normal(k1, (B, C, H, W), dtype=jnp.float32)
    target = (jax.random.uniform(k2, (B, C, H, W)) > 0.5).astype(jnp.float32)

    out = jax.block_until_ready(lc_dice_loss(pred, target))
    ref = jax.block_until_ready(lc_dice_loss_ref(pred, target))
    assert jnp.allclose(out, ref, rtol=1e-5, atol=1e-5), (out, ref)

    # Case 2: class-index target (one-hot branch) + ragged F (padding path).
    H2, W2 = 15, 15
    pred2 = jax.random.normal(k3, (B, C, H2, W2), dtype=jnp.float32)
    target2 = jax.random.randint(k4, (B, 1, H2, W2), 0, C)

    out2 = jax.block_until_ready(lc_dice_loss(pred2, target2))
    ref2 = jax.block_until_ready(lc_dice_loss_ref(pred2, target2))
    assert jnp.allclose(out2, ref2, rtol=1e-5, atol=1e-5), (out2, ref2)

    print("KERNEL_OK")
</pallas_src>

<mosaic_0001>
module attributes {stable_mosaic.version = 11 : i64} {
  func.func @_lcdice_partial_kernel(%arg0: i32, %arg1: i32, %arg2: memref<1x8x128xf32, #tpu.memory_space<vmem>>, %arg3: memref<1x8x128xf32, #tpu.memory_space<vmem>>, %arg4: memref<1x4x128xf32, #tpu.memory_space<vmem>>, %arg5: memref<4x128xf32, #tpu.memory_space<vmem>>) attributes {dimension_semantics = [#tpu.dimension_semantics<parallel>, #tpu.dimension_semantics<arbitrary>], iteration_bounds = array<i64: 2, 1>, scalar_prefetch = 0 : i64, scratch_operands = 1 : i64, tpu.core_type = #tpu.core_type<tc>, window_params = [{transform_indices = @transform_0, window_bounds = array<i64: 1, 8, 128>}, {transform_indices = @transform_1, window_bounds = array<i64: 1, 8, 128>}, {transform_indices = @transform_2, window_bounds = array<i64: 1, 4, 128>}]} {
    %c0_i32 = arith.constant 0 : i32
    %0 = arith.cmpi eq, %arg1, %c0_i32 : i32
    %1 = arith.extui %0 : i1 to i32
    %c0_i32_0 = arith.constant 0 : i32
    %2 = arith.cmpi ne, %1, %c0_i32_0 : i32
    scf.if %2 {
      %cst_20 = arith.constant 0.000000e+00 : f32
      %39 = vector.broadcast %cst_20 : f32 to vector<4x128xf32>
      %c0_21 = arith.constant 0 : index
      %c0_22 = arith.constant 0 : index
      %40 = vector.load %arg5[%c0_21, %c0_22] : memref<4x128xf32, #tpu.memory_space<vmem>>, vector<4x128xf32>
      tpu.vector_store %arg5[%c0_21, %c0_22], %39 {strides = array<i32>} : memref<4x128xf32, #tpu.memory_space<vmem>>, vector<4x128xf32>,
    } else {
    }
    %c0 = arith.constant 0 : index
    %c0_1 = arith.constant 0 : index
    %c0_2 = arith.constant 0 : index
    %3 = vector.load %arg2[%c0, %c0_1, %c0_2] : memref<1x8x128xf32, #tpu.memory_space<vmem>>, vector<1x8x128xf32>
    %4 = vector.shape_cast %3 : vector<1x8x128xf32> to vector<8x128xf32>
    %c0_3 = arith.constant 0 : index
    %c0_4 = arith.constant 0 : index
    %c0_5 = arith.constant 0 : index
    %5 = vector.load %arg3[%c0_3, %c0_4, %c0_5] : memref<1x8x128xf32, #tpu.memory_space<vmem>>, vector<1x8x128xf32>
    %6 = vector.shape_cast %5 : vector<1x8x128xf32> to vector<8x128xf32>
    %cst = arith.constant 5.000000e-01 : f32
    %7 = vector.broadcast %cst : f32 to vector<8x128xf32>
    %8 = arith.mulf %7, %4 : vector<8x128xf32>
    %9 = math.tanh %8 : vector<8x128xf32>
    %cst_6 = arith.constant 5.000000e-01 : f32
    %10 = vector.broadcast %cst_6 : f32 to vector<8x128xf32>
    %11 = arith.mulf %10, %9 : vector<8x128xf32>
    %cst_7 = arith.constant 5.000000e-01 : f32
    %12 = vector.broadcast %cst_7 : f32 to vector<8x128xf32>
    %13 = arith.addf %11, %12 : vector<8x128xf32>
    %14 = arith.subf %13, %6 : vector<8x128xf32>
    %15 = math.absf %14 : vector<8x128xf32>
    %cst_8 = arith.constant -2.000000e+00 : f32
    %16 = vector.broadcast %cst_8 : f32 to vector<8x128xf32>
    %17 = arith.mulf %16, %15 : vector<8x128xf32>
    %18 = math.exp %17 : vector<8x128xf32>
    %19 = math.log1p %18 : vector<8x128xf32>
    %20 = arith.addf %15, %19 : vector<8x128xf32>
    %cst_9 = arith.constant 0.693147182 : f32
    %21 = vector.broadcast %cst_9 : f32 to vector<8x128xf32>
    %22 = arith.subf %20, %21 : vector<8x128xf32>
    %cst_10 = arith.constant dense<0.000000e+00> : vector<128xf32>
    %23 = vector.multi_reduction <add>, %22, %cst_10 [0] : vector<8x128xf32> to vector<128xf32>
    %24 = vector.shape_cast %23 : vector<128xf32> to vector<1x128xf32>
    %25 = arith.mulf %13, %6 : vector<8x128xf32>
    %cst_11 = arith.constant dense<0.000000e+00> : vector<128xf32>
    %26 = vector.multi_reduction <add>, %25, %cst_11 [0] : vector<8x128xf32> to vector<128xf32>
    %27 = vector.shape_cast %26 : vector<128xf32> to vector<1x128xf32>
    %cst_12 = arith.constant dense<0.000000e+00> : vector<128xf32>
    %28 = vector.multi_reduction <add>, %13, %cst_12 [0] : vector<8x128xf32> to vector<128xf32>
    %29 = vector.shape_cast %28 : vector<128xf32> to vector<1x128xf32>
    %cst_13 = arith.constant dense<0.000000e+00> : vector<128xf32>
    %30 = vector.multi_reduction <add>, %6, %cst_13 [0] : vector<8x128xf32> to vector<128xf32>
    %31 = vector.shape_cast %30 : vector<128xf32> to vector<1x128xf32>
    %32 = tpu.concatenate %24, %27, %29, %31 in 0 : vector<1x128xf32>, vector<1x128xf32>, vector<1x128xf32>, vector<1x128xf32> -> vector<4x128xf32>
    %c0_14 = arith.constant 0 : index
    %c0_15 = arith.constant 0 : index
    %33 = vector.load %arg5[%c0_14, %c0_15] : memref<4x128xf32, #tpu.memory_space<vmem>>, vector<4x128xf32>
    %34 = arith.addf %33, %32 : vector<4x128xf32>
    %c0_16 = arith.constant 0 : index
    %c0_17 = arith.constant 0 : index
    %35 = vector.load %arg5[%c0_16, %c0_17] : memref<4x128xf32, #tpu.memory_space<vmem>>, vector<4x128xf32>
    tpu.vector_store %arg5[%c0_16, %c0_17], %34 {strides = array<i32>} : memref<4x128xf32, #tpu.memory_space<vmem>>, vector<4x128xf32>,
    %c0_i32_18 = arith.constant 0 : i32
    %36 = arith.cmpi eq, %arg1, %c0_i32_18 : i32
    %37 = arith.extui %36 : i1 to i32
    %c0_i32_19 = arith.constant 0 : i32
    %38 = arith.cmpi ne, %37, %c0_i32_19 : i32
    scf.if %38 {
      %c0_20 = arith.constant 0 : index
      %c0_21 = arith.constant 0 : index
      %39 = vector.load %arg5[%c0_20, %c0_21] : memref<4x128xf32, #tpu.memory_space<vmem>>, vector<4x128xf32>
      %40 = vector.shape_cast %39 : vector<4x128xf32> to vector<1x4x128xf32>
      %c0_22 = arith.constant 0 : index
      %c0_23 = arith.constant 0 : index
      %c0_24 = arith.constant 0 : index
      %41 = vector.load %arg4[%c0_22, %c0_23, %c0_24] : memref<1x4x128xf32, #tpu.memory_space<vmem>>, vector<1x4x128xf32>
      tpu.vector_store %arg4[%c0_22, %c0_23, %c0_24], %40 {strides = array<i32>} : memref<1x4x128xf32, #tpu.memory_space<vmem>>, vector<1x4x128xf32>,
    } else {
    }
    return
  }
  func.func @transform_0(%arg0: i32, %arg1: i32) -> (i32, i32, i32) {
    %c0_i32 = arith.constant 0 : i32
    %c0_i32_0 = arith.constant 0 : i32
    return %arg0, %arg1, %c0_i32 : i32, i32, i32
  }
  func.func @transform_1(%arg0: i32, %arg1: i32) -> (i32, i32, i32) {
    %c0_i32 = arith.constant 0 : i32
    %c0_i32_0 = arith.constant 0 : i32
    return %arg0, %arg1, %c0_i32 : i32, i32, i32
  }
  func.func @transform_2(%arg0: i32, %arg1: i32) -> (i32, i32, i32) {
    %c0_i32 = arith.constant 0 : i32
    %c0_i32_0 = arith.constant 0 : i32
    %c0_i32_1 = arith.constant 0 : i32
    return %arg0, %c0_i32, %c0_i32_0 : i32, i32, i32
  }
}

</mosaic_0001>

<bundles_post_ra>
// kernel: tpu_custom_call.1
= control target key start
LH: loop header
LB: loop body
LE: loop exit
PB: predicated region body
PF: predicated region fallthrough
CT: control target
= control target key end

     0   :  { %7 = vsyncpa [#allocation4], 0  ;;  %s817_s0 = inlined_call_operand.hbm [shape: f32[2,8,128], index: 0, kind: input, shape index: {}]   ;;  %s818_s1 = inlined_call_operand.hbm [shape: f32[2,8,128], index: 1, kind: input, shape index: {}]   ;;  %s819_s2 = inlined_call_operand.hbm [shape: f32[2,4,128], index: 2, kind: output, shape index: {}]  }
   0x1   :  { %9 = vsyncpa [#allocation4 + $0x1], 0 }
   0x2   :  { %10 = vsyncpa [#allocation7], 0 }
   0x3   :  { %12 = vsyncpa [#allocation7 + $0x1], 0 }
   0x4   :  { %13 = vsyncpa [#allocation5], 0 }
   0x5   :  { %15 = vsyncpa [#allocation5 + $0x1], 0  ;;  %s649_s9 = smov 0   ;;  %s651_s10 = smov 0  }
   0x6   :  { %s653_s11 = smov 0   ;;  %s655_s12 = smov 0  }
   0x7   :  { %s657_s13 = smov 0   ;;  %s659_s14 = smov 0  }
   0x8 LB: > { %s397_s15 = sadd.s32 4294967295, %s628_s14   ;;  %s398_s16 = sadd.s32 4294967294, %s628_s14   ;;  %s628_s14 = sphi %s659_s14, %s21_s14   ;;  %s624_s13 = sphi %s657_s13, %s831_s13   ;;  %s620_s12 = sphi %s655_s12, %s830_s12   ;;  %s616_s11 = sphi %s653_s11, %s829_s11   ;;  %s612_s10 = sphi %s651_s10, %s828_s10   ;;  %s608_s9 = sphi %s649_s9, %s827_s9  }
   0x9   : > { %s33_s17 = sadd.s32 1, %s624_s13  ;;  %s42_s18 = sadd.s32 1, %s616_s11 }
   0xa   : > { %p35_p0 = scmp.ge.s32.totalorder %s33_s17, 2  ;;  %p49_p1 = scmp.ne.s32.totalorder %s616_s11, %s612_s10 }
   0xb   : > { %p50_p2 = scmp.eq.s32.totalorder %s628_s14, 0  ;;  %p55_p3 = scmp.ne.s32.totalorder %s612_s10, %s608_s9 }
   0xc   : > { %s833_s17 = smov (%p35_p0, %s33_s17), 0  ;;  %p56_p5 = scmp.eq.s32.totalorder %s397_s15, 0 }
   0xd   : > { %p690_p4 = por %p50_p2, %p49_p1  ;;  %s37_s20 = ssub.s32 %s624_s13, %s833_s17 }
   0xe   : > { %p107_p6 = scmp.eq.s32.totalorder %s397_s15, 1  ;;  %p40_p7 = scmp.eq.s32.totalorder %s37_s20, 0 }
   0xf   : > { %p696_p8 = por %p56_p5, %p55_p3  ;;  %p113_p10 = scmp.eq.s32.totalorder %s398_s16, 1 }
  0x10   : > { %p700_p9 = por %p107_p6, %p49_p1  ;;  %p431_p13 = scmp.lt.s32.totalorder %s628_s14, 2 }
  0x11   : > { %s705_s23 = scalar_select %p40_p7, %s616_s11, %s42_s18  }
  0x12   : > { %p707_p11 = por %p113_p10, %p55_p3  ;;  %s714_s25 = sand.u32 1, %s616_s11  }
  0x13   : > { %s401_s26 = sshll.u32 %s714_s25, 3  ;;  %s402_s27 = sshll.u32 %s624_s13, 7 }
  0x14   : > { %s143_s30 = scalar_lea.hbm %s817_s0, %s402_s27  ;;  %s137_s3 = scalar_lea.vmem [#allocation3], %s401_s26 }
  0x15   : > { %s145_s4 = sshll.u32 %s137_s3, 4  ;;  %p723_p0 = pnand %p431_p13, %p690_p4  ;;  %s146_s4 = int_to_ptr.vmem [resolvable:$true] %s145_s4 }
  0x16   : > { %p405_p1 = scmp.ge.s32.totalorder %s628_s14, 1  ;;  %p169_p2 = scmp.lt.s32.totalorder %s628_s14, 3 }
  0x17   : > { %s134_s6 = scalar_lea.sflag [#allocation4], %s714_s25  ;;  %p490_p3 = pneg %p723_p0 }
  0x18   : > { %s501_s7 = scalar_lea.vmem %s146_s4, 128  ;;  %s630_s8 = smov [#allocation3]  }
  0x19   : > { %p502_p5 = scmp.ne.s32.totalorder %s146_s4, %s501_s7  ;;  %s506_s15 = sshll.u32 %s630_s8, 4  ;;  %s507_s15 = int_to_ptr.vmem [resolvable:$false] %s506_s15 }
  0x1a   : > { %s508_s16 = scalar_lea.vmem %s507_s15, 256  ;;  %p509_p4 = scmp.lt.s32.totalorder %s146_s4, %s507_s15 }
  0x1b   : > { %p504_p6 = pnand %p502_p5, %p490_p3  ;;  %p510_p10 = scmp.lt.s32.totalorder %s508_s16, %s501_s7 }
  0x1d   : > { %p505_p7 = pneg %p504_p6  ;;  %p511_p13 = por %p510_p10, %p509_p4 }
  0x1f   : > { %p512_p12 = pnand %p511_p13, %p505_p7 }
  0x21   : > { %515 = shalt.err (!%p512_p12)
}
  0x22   : > { %423 = dma.hbm_to_vmem [thread:$0]  (!%p723_p0), %s143_s30, 128, %s146_s4, %s134_s6  }
  0x23   : > { %p741_p5 = pnand %p405_p1, %p169_p2  ;;  %s162_s28 = scalar_lea.hbm %s818_s1, %s402_s27 }
  0x24   : > { %s156_s29 = scalar_lea.vmem [#allocation6], %s401_s26  ;;  %s153_s7 = scalar_lea.sflag [#allocation7], %s714_s25 }
  0x25   : > { %s164_s3 = sshll.u32 %s156_s29, 4  ;;  %s631_s30 = smov [#allocation6]   ;;  %s165_s3 = int_to_ptr.vmem [resolvable:$true] %s164_s3 }
  0x26   : > { %s529_s8 = scalar_lea.vmem %s165_s3, 128  ;;  %s534_s4 = sshll.u32 %s631_s30, 4  ;;  %s535_s4 = int_to_ptr.vmem [resolvable:$false] %s534_s4 }
  0x27   : > { %p530_p12 = scmp.ne.s32.totalorder %s165_s3, %s529_s8  ;;  %s536_s6 = scalar_lea.vmem %s535_s4, 256 }
  0x28   : > { %p537_p1 = scmp.lt.s32.totalorder %s165_s3, %s535_s4  ;;  %p538_p2 = scmp.lt.s32.totalorder %s536_s6, %s529_s8 }
  0x29   : > { %p532_p6 = pnand %p530_p12, %p490_p3 }
  0x2a   : > { %p539_p4 = por %p538_p2, %p537_p1 }
  0x2b   : > { %p533_p7 = pneg %p532_p6 }
  0x2d   : > { %p540_p10 = pnand %p539_p4, %p533_p7 }
  0x2f   : > { %543 = shalt.err (!%p540_p10)
}
  0x30   : > { %426 = dma.hbm_to_vmem [thread:$0]  (!%p723_p0), %s162_s28, 128, %s165_s3, %s153_s7  }
  0x31   : > { %173 = sbr.rel (%p741_p5) target bundleno = 161 (0xa1), region = 28  ;;  %s757_s25 = sand.u32 (!%p741_p5), 1, %s612_s10  }
  0x32   : > { %s406_s26 = sshll.u32 (!%p741_p5), %s757_s25, 3  ;;  %s176_s27 = scalar_lea.sflag (!%p741_p5), [#allocation4], %s757_s25 }
  0x33   : > { %s179_s15 = scalar_lea.vmem (!%p741_p5), [#allocation3], %s406_s26 }
  0x36   : > { %595 = dma.done.wait (%p696_p8), %s176_s27, 128  }
  0x37   : > { %597 = vsyncadd (%p696_p8), %s176_s27, 4294967168  ;;  %s185_s5 = scalar_lea.sflag [#allocation7], %s757_s25  ;;  %s188_s16 = scalar_lea.vmem [#allocation6], %s406_s26 }
  0x38   : > { %599 = dma.done.wait (%p696_p8), %s185_s5, 128  }
  0x39   : > { %601 = vsyncadd (%p696_p8), %s185_s5, 4294967168  ;;  %v632_v0 = vmov 0.0   ;;  %v219_v1 = vld [vmem:[%s179_s15] sm:$0xff]  ;;  %v220_v5 = vld [vmem:[%s188_s16] sm:$0xff]  ;;  %vm266_vm1 = vcmask 1040384   ;;  %vm268_vm2 = vcmask 1041408  }
  0x3a   : > { %218 = vst [vmem:[#allocation2] sm:$0xf] %v632_v0  ;;  %v221_v2 = vmul.f32 0.5, %v219_v1  ;;  %v260_v19 = vrot.slane %v220_v5, 4  ;;  %vm270_vm3 = vcmask 1042432   ;;  %s408_s21 = sshll.u32 %s757_s25, 2 }
  0x3b   : > { %s213_s18 = scalar_lea.vmem [#allocation8], %s408_s21  ;;  %s411_s20 = sshll.u32 %s620_s12, 6 }
  0x3c   : > { %482 = vtanh.f32 %v221_v2  ;;  %v261_v25 = vadd.f32 %v260_v19, %v220_v5  ;;  %s294_s19 = sshll.u32 %s213_s18, 4  ;;  %s292_s3 = scalar_lea.hbm %s819_s2, %s411_s20  ;;  %s772_s19 = int_to_ptr.vmem [resolvable:$true] %s294_s19 }
  0x3d   : > { %s281_s7 = scalar_lea.sflag [#allocation5], %s757_s25  ;;  %s544_s8 = scalar_lea.vmem %s772_s19, 64 }
  0x3e   : > { %v262_v31 = vrot.slane %v261_v25, 2  ;;  %p545_p8 = scmp.ne.s32.totalorder %s772_s19, %s544_s8  ;;  %s633_s30 = smov [#allocation8]  }
  0x3f   : > { %s548_s4 = sshll.u32 %s633_s30, 4  ;;  %s549_s4 = int_to_ptr.vmem [resolvable:$false] %s548_s4 }
  0x40   : > { %v263_v36 = vadd.f32 %v262_v31, %v261_v25  ;;  %p546_p0 = pnand %p545_p8, %p700_p9  ;;  %s550_s12 = scalar_lea.vmem %s549_s4, 128 }
  0x41   : > { %v272_v48 = vld [vmem:[#allocation2] sm:$0xf]  ;;  %p551_p13 = scmp.lt.s32.totalorder %s772_s19, %s549_s4  ;;  %p552_p5 = scmp.lt.s32.totalorder %s550_s12, %s544_s8 }
  0x42   : > { %v264_v41 = vrot.slane %v263_v36, 1  ;;  %p547_p3 = pneg %p546_p0 }
  0x43   : > { %p553_p12 = por %p552_p5, %p551_p13 }
  0x44   : > { %v265_v46 = vadd.f32 %v264_v41, %v263_v36 }
  0x45   : > { %p554_p6 = pnand %p553_p12, %p547_p3 }
  0x49   : > { %v483_v3 = vpop.eup %482 }
  0x4a   : > { %v223_v4 = vmul.f32 0.5, %v483_v3 }
  0x4c   : > { %v224_v6 = vadd.f32 0.5, %v223_v4 }
  0x4e   : > { %v225_v7 = vsub.f32 %v224_v6, %v220_v5  ;;  %v247_v14 = vmul.f32 %v224_v6, %v220_v5  ;;  %v254_v18 = vrot.slane %v224_v6, 4 }
  0x50   : > { %v226_v8 = vand.u32 2147483647, %v225_v7  ;;  %v248_v17 = vrot.slane %v247_v14, 4  ;;  %v255_v24 = vadd.f32 %v254_v18, %v224_v6 }
  0x52   : > { %v227_v9 = vmul.f32 -2.0, %v226_v8  ;;  %v249_v22 = vadd.f32 %v248_v17, %v247_v14  ;;  %v256_v29 = vrot.slane %v255_v24, 2 }
  0x54   : > { %v228_v10 = vmul.f32 1.442695, %v227_v9  ;;  %v250_v28 = vrot.slane %v249_v22, 2  ;;  %v257_v34 = vadd.f32 %v256_v29, %v255_v24 }
  0x56   : > { %484 = vpow2.f32 %v228_v10  ;;  %v251_v33 = vadd.f32 %v250_v28, %v249_v22  ;;  %v258_v39 = vrot.slane %v257_v34, 1 }
  0x58   : > { %v252_v38 = vrot.slane %v251_v33, 1  ;;  %v259_v44 = vadd.f32 %v258_v39, %v257_v34 }
  0x5a   : > { %v253_v43 = vadd.f32 %v252_v38, %v251_v33 }
  0x63   : > { %v485_v11 = vpop.eup %484 }
  0x64   : > { %v230_v12 = vadd.f32 1.0, %v485_v11  ;;  %v233_v13 = vmul.f32 -0.5, %v485_v11  ;;  %v236_v16 = vand.u32 2147483647, %v485_v11 }
  0x66   : > { %486 = vlog2.f32 %v230_v12  ;;  %v234_v15 = vadd.f32 1.0, %v233_v13  ;;  %vm237_vm0 = vcmp.lt.f32.partialorder %v236_v16, 0.0004427343 }
  0x68   : > { %v235_v20 = vmul.f32 %v485_v11, %v234_v15 }
  0x73   : > { %v487_v21 = vpop.eup %486 }
  0x74   : > { %v232_v23 = vmul.f32 0.6931472, %v487_v21 }
  0x76   : > { %v238_v26 = vsel %vm237_vm0, %v235_v20, %v232_v23 }
  0x77   : > { %v239_v27 = vadd.f32 %v238_v26, %v226_v8 }
  0x79   : > { %v409_v30 = vadd.f32 -0.6931472, %v239_v27 }
  0x7b   : > { %v241_v32 = vrot.slane %v409_v30, 4 }
  0x7d   : > { %v242_v35 = vadd.f32 %v409_v30, %v241_v32 }
  0x7f   : > { %v243_v37 = vrot.slane %v242_v35, 2 }
  0x81   : > { %v244_v40 = vadd.f32 %v243_v37, %v242_v35 }
  0x83   : > { %v245_v42 = vrot.slane %v244_v40, 1 }
  0x85   : > { %v246_v45 = vadd.f32 %v245_v42, %v244_v40 }
  0x87   : > { %v267_v47 = vsel %vm266_vm1, %v246_v45, %v253_v43 }
  0x88   : > { %v269_v49 = vsel %vm268_vm2, %v267_v47, %v259_v44 }
  0x89   : > { %v271_v50 = vsel %vm270_vm3, %v269_v49, %v265_v46 }
  0x8a   : > { %v273_v51 = vadd.f32 %v272_v48, %v271_v50 }
  0x8c   : > { %274 = vst [vmem:[#allocation2] sm:$0xf] %v273_v51 }
  0x93   : > { %v278_v52 = vld [vmem:[#allocation2] sm:$0xf] }
  0x94   : > { %279 = vst [vmem:[%s213_s18] sm:$0xf] %v278_v52 }
  0x95   : > { %557 = shalt.err (!%p554_p6)
}
  0x96   : > { %s558_s6 = scalar_lea.hbm %s292_s3, 64  ;;  %s562_s27 = scalar_lea.hbm %s819_s2, 128 }
  0x97   : > { %p559_p7 = scmp.ne.s32.totalorder %s292_s3, %s558_s6  ;;  %p563_p4 = scmp.lt.s32.totalorder %s292_s3, %s819_s2 }
  0x98   : > { %p564_p10 = scmp.lt.s32.totalorder %s562_s27, %s558_s6 }
  0x99   : > { %p560_p1 = pnand %p559_p7, %p700_p9 }
  0x9a   : > { %p565_p8 = por %p564_p10, %p563_p4 }
  0x9b   : > { %p561_p2 = pneg %p560_p1 }
  0x9d   : > { %p566_p0 = pnand %p565_p8, %p561_p2 }
  0x9f   : > { %569 = shalt.err (!%p566_p0)
}
  0xa0   : > { %418 = dma.vmem_to_hbm [thread:$0]  (%p700_p9), %s772_s19, 64, %s292_s3, %s281_s7  }
  0xa1 PF: > { %s306_s16 = sand.u32 1, %s608_s9   ;;  %p826_p3 = scmp.ge.s32.totalorder %s628_s14, 2 }
  0xa2   : > { %s307_s21 = scalar_lea.sflag [#allocation5], %s306_s16 }
  0xa3   : > { %p428_p13 = pnand %p826_p3, %p707_p11 }
  0xa5   : > { %p429_p5 = pneg %p428_p13 }
  0xa7   : > { %603 = dma.done.wait (%p429_p5), %s307_s21, 64  }
  0xa8   : > { %605 = vsyncadd (%p429_p5), %s307_s21, 4294967232  ;;  %s21_s14 = sadd.s32 1, %s628_s14   ;;  %s827_s9 = smov %s612_s10 }
  0xa9   : > { %p18_p12 = scmp.ge.s32.totalorder %s21_s14, 4   ;;  %s828_s10 = smov %s616_s11 }
  0xaa   : > { %s829_s11 = smov %s705_s23  ;;  %s830_s12 = smov %s624_s13 }
  0xab   : > { %s831_s13 = smov %s833_s17  ;;  %20 = sbr.rel (!%p18_p12) target bundleno = 8 (0x8), region = 94 }
  0xb0   :  { %312 = vsyncpa [#allocation4], 1 }
  0xb1   :  { %314 = vsyncpa [#allocation4 + $0x1], 1 }
  0xb2   :  { %315 = vsyncpa [#allocation7], 1 }
  0xb3   :  { %317 = vsyncpa [#allocation7 + $0x1], 1 }
  0xb4   :  { %318 = vsyncpa [#allocation5], 1 }
  0xb5   :  { %320 = vsyncpa [#allocation5 + $0x1], 1 }

</bundles_post_ra>
